<compile_context>
chip_gen: v7x
topology: tpu7x:2x2x1
jax: 0.10.0
libtpu: 0.0.40
codegen_flags: <defaults>
</compile_context>

<pallas_src>
import functools

import jax
import jax.numpy as jnp
from jax import lax
from jax.experimental import pallas as pl
from jax.experimental.pallas import tpu as pltpu

L1 = 0.3
L2 = 0.33

_LANE = 128
_SUBLANE = 8
_MIN_BLK = _SUBLANE * _LANE  # 1024 states: smallest (8,128)-aligned batch tile


def polar_to_cartesian_ref(x):
    """Pure-JAX equivalent of torch polar_to_cartesian (used for __init__-time
    target conversion, the single-state forward, and the correctness reference)."""
    out_pos1 = L1 * jnp.cos(x[0]) + L2 * jnp.cos(x[0] + x[1])
    out_pos2 = L1 * jnp.sin(x[0]) + L2 * jnp.sin(x[0] + x[1])
    out_speed1 = -L1 * x[2] * jnp.sin(x[0]) - L2 * (x[2] + x[3]) * jnp.sin(x[0] + x[1])
    out_speed2 = L1 * x[2] * jnp.cos(x[0]) + L2 * (x[2] + x[3]) * jnp.cos(x[0] + x[1])
    return jnp.stack((out_pos1, out_pos2, out_speed1, out_speed2))


def _round_up(n, m):
    return -(-n // m) * m


def _target_cost_kernel(x_ref, o_ref, *, tx, ty, half_reg, sub):
    # x_ref: (4, R_BLK, 128) VMEM, component-major [theta1, theta2, omega1, omega2].
    # o_ref: (R_BLK, 128) VMEM, per-state scalar cost (sublane- and lane-dense).
    n_sub = o_ref.shape[0] // sub  # static Python int

    def body(i, carry):
        r0 = pl.multiple_of(i * sub, sub)
        th1 = x_ref[0, pl.ds(r0, sub), :]
        th2 = x_ref[1, pl.ds(r0, sub), :]
        w1 = x_ref[2, pl.ds(r0, sub), :]
        w2 = x_ref[3, pl.ds(r0, sub), :]

        th12 = th1 + th2
        w12 = w1 + w2

        c1, s1 = jnp.cos(th1), jnp.sin(th1)      # 4 EUP transcendentals / state
        c12, s12 = jnp.cos(th12), jnp.sin(th12)  # -> the binding unit

        # polar_to_cartesian, fully inside the kernel (VPU only).
        px = L1 * c1 + L2 * c12
        py = L1 * s1 + L2 * s12
        vx = -L1 * w1 * s1 - L2 * w12 * s12
        vy = L1 * w1 * c1 + L2 * w12 * c12

        dpx = px - tx                            # target baked in as closure constants
        dpy = py - ty
        o_ref[pl.ds(r0, sub), :] = (
            0.5 * (dpx * dpx + dpy * dpy) + half_reg * (vx * vx + vy * vy)
        )
        return carry

    # Fully-unrolled chunk loop: bounds live ranges per chunk, LLO sees straight code.
    lax.fori_loop(0, n_sub, body, 0, unroll=True)


class TwoLinksArmTargetCost:
    """Pallas equivalent of the PyTorch module.  __init__ converts the polar target
    to cartesian once and bakes it (plus 0.5*reg_speed) into the kernel closure
    (each distinct (target, reg_speed) instance recompiles — intended)."""

    def __init__(self, target_polar, reg_speed, block_states=64 * 1024):
        target_cart = polar_to_cartesian_ref(jnp.asarray(target_polar, jnp.float32))
        self._target_cart = target_cart
        self._tx = float(target_cart[0])
        self._ty = float(target_cart[1])
        self._half_reg = 0.5 * float(reg_speed)
        # States per grid step; rounded to the (8,128)-aligned minimum tile.
        self._block_states = max(_MIN_BLK, _round_up(int(block_states), _MIN_BLK))

    def forward_batch(self, x):
        """x: (B, 4) polar states -> (B,) costs (Pallas path)."""
        x = jnp.asarray(x, jnp.float32)
        b = x.shape[0]

        # --- choose grid / block (Python-level, static per batch size) ---
        bp_min = _round_up(b, _MIN_BLK)
        g = max(1, -(-bp_min // self._block_states))
        if bp_min >= 2 * _MIN_BLK:
            g = max(g, 2)  # keep >=2 grid steps so "parallel" shards across v7x's 2 TCs
        blk = _round_up(-(-bp_min // g), _MIN_BLK)  # states per step, multiple of 1024
        bp = blk * g
        r_blk = blk // _LANE                         # multiple of 8
        r_tot = bp // _LANE
        sub = 16 if r_blk % 16 == 0 else 8           # in-kernel chunk height

        # Single transpose+pad pass (no zeros + dynamic-update-slice double pass),
        # then a free contiguous reshape to component-major (4, R, 128).
        xt = jnp.pad(x.T, ((0, 0), (0, bp - b))).reshape(4, r_tot, _LANE)

        kernel = functools.partial(
            _target_cost_kernel,
            tx=self._tx, ty=self._ty, half_reg=self._half_reg, sub=sub,
        )
        out = pl.pallas_call(
            kernel,
            out_shape=jax.ShapeDtypeStruct((r_tot, _LANE), jnp.float32),
            grid=(g,),
            in_specs=[pl.BlockSpec((4, r_blk, _LANE), lambda i: (0, i, 0))],
            out_specs=pl.BlockSpec((r_blk, _LANE), lambda i: (i, 0)),
            compiler_params=pltpu.CompilerParams(
                dimension_semantics=("parallel",),
            ),
        )(xt)
        return out.reshape(-1)[:b]

    def forward(self, x):
        """Original module semantics: single (4,) polar state -> scalar cost.
        Per perf review, one state is not worth a padded 1024-lane Pallas launch;
        plain JAX reproduces the reference exactly."""
        inp = polar_to_cartesian_ref(jnp.asarray(x, jnp.float32))
        dpos = inp[0:2] - self._target_cart[0:2]
        return 0.5 * jnp.dot(dpos, dpos) + self._half_reg * jnp.dot(inp[2:4], inp[2:4])

    __call__ = forward_batch


if __name__ == "__main__":
    key = jax.random.PRNGKey(0)
    k_target, k_input = jax.random.split(key)

    # Deterministic "module parameters": polar target + speed regularizer.
    target_polar = jax.random.uniform(k_target, (4,), jnp.float32, -1.0, 1.0)
    reg_speed = 0.1
    module = TwoLinksArmTargetCost(target_polar, reg_speed)

    # Small demo batch: pads to 4096 states -> grid of 2 parallel steps, R_BLK=16.
    B = 2500
    x = jax.random.uniform(k_input, (B, 4), jnp.float32, -1.0, 1.0)

    costs = jax.block_until_ready(module.forward_batch(x))
    assert costs.shape == (B,)

    # Pure-JAX reference of the original forward pass, vmapped over the batch.
    target_cart = polar_to_cartesian_ref(target_polar)

    def ref_cost(xi):
        inp = polar_to_cartesian_ref(xi)
        dpos = inp[0:2] - target_cart[0:2]
        return 0.5 * jnp.dot(dpos, dpos) + 0.5 * reg_speed * jnp.dot(inp[2:4], inp[2:4])

    ref = jax.vmap(ref_cost)(x)
    assert jnp.allclose(costs, ref, atol=1e-5, rtol=1e-5), (costs[:4], ref[:4])

    # Single-state path (exact original module interface) still matches.
    c0 = jax.block_until_ready(module.forward(x[0]))
    assert jnp.allclose(c0, ref[0], atol=1e-5, rtol=1e-5), (c0, ref[0])

    print("KERNEL_OK")
</pallas_src>

<mosaic_0001>
module attributes {stable_mosaic.version = 11 : i64} {
  func.func @_target_cost_kernel(%arg0: i32, %arg1: memref<4x16x128xf32, #tpu.memory_space<vmem>>, %arg2: memref<16x128xf32, #tpu.memory_space<vmem>>) attributes {dimension_semantics = [#tpu.dimension_semantics<parallel>], iteration_bounds = array<i64: 2>, scalar_prefetch = 0 : i64, scratch_operands = 0 : i64, tpu.core_type = #tpu.core_type<tc>, window_params = [{transform_indices = @transform_0, window_bounds = array<i64: 4, 16, 128>}, {transform_indices = @transform_1, window_bounds = array<i64: 16, 128>}]} {
    %c0_i32 = arith.constant 0 : i32
    %c16_i32 = arith.constant 16 : i32
    %0 = arith.muli %c0_i32, %c16_i32 : i32
    %1 = tpu.assume_multiple %0, 16 : i32
    %c0 = arith.constant 0 : index
    %2 = arith.index_cast %1 : i32 to index
    %c0_0 = arith.constant 0 : index
    %3 = vector.load %arg1[%c0, %2, %c0_0] : memref<4x16x128xf32, #tpu.memory_space<vmem>>, vector<1x16x128xf32>
    %4 = vector.shape_cast %3 : vector<1x16x128xf32> to vector<16x128xf32>
    %c1 = arith.constant 1 : index
    %5 = arith.index_cast %1 : i32 to index
    %c0_1 = arith.constant 0 : index
    %6 = vector.load %arg1[%c1, %5, %c0_1] : memref<4x16x128xf32, #tpu.memory_space<vmem>>, vector<1x16x128xf32>
    %7 = vector.shape_cast %6 : vector<1x16x128xf32> to vector<16x128xf32>
    %c2 = arith.constant 2 : index
    %8 = arith.index_cast %1 : i32 to index
    %c0_2 = arith.constant 0 : index
    %9 = vector.load %arg1[%c2, %8, %c0_2] : memref<4x16x128xf32, #tpu.memory_space<vmem>>, vector<1x16x128xf32>
    %10 = vector.shape_cast %9 : vector<1x16x128xf32> to vector<16x128xf32>
    %c3 = arith.constant 3 : index
    %11 = arith.index_cast %1 : i32 to index
    %c0_3 = arith.constant 0 : index
    %12 = vector.load %arg1[%c3, %11, %c0_3] : memref<4x16x128xf32, #tpu.memory_space<vmem>>, vector<1x16x128xf32>
    %13 = vector.shape_cast %12 : vector<1x16x128xf32> to vector<16x128xf32>
    %14 = arith.addf %4, %7 : vector<16x128xf32>
    %15 = arith.addf %10, %13 : vector<16x128xf32>
    %16 = math.cos %4 : vector<16x128xf32>
    %17 = math.sin %4 : vector<16x128xf32>
    %18 = math.cos %14 : vector<16x128xf32>
    %19 = math.sin %14 : vector<16x128xf32>
    %cst = arith.constant 3.000000e-01 : f32
    %20 = vector.broadcast %cst : f32 to vector<16x128xf32>
    %21 = arith.mulf %20, %16 : vector<16x128xf32>
    %cst_4 = arith.constant 3.300000e-01 : f32
    %22 = vector.broadcast %cst_4 : f32 to vector<16x128xf32>
    %23 = arith.mulf %22, %18 : vector<16x128xf32>
    %24 = arith.addf %21, %23 : vector<16x128xf32>
    %cst_5 = arith.constant 3.000000e-01 : f32
    %25 = vector.broadcast %cst_5 : f32 to vector<16x128xf32>
    %26 = arith.mulf %25, %17 : vector<16x128xf32>
    %cst_6 = arith.constant 3.300000e-01 : f32
    %27 = vector.broadcast %cst_6 : f32 to vector<16x128xf32>
    %28 = arith.mulf %27, %19 : vector<16x128xf32>
    %29 = arith.addf %26, %28 : vector<16x128xf32>
    %cst_7 = arith.constant -3.000000e-01 : f32
    %30 = vector.broadcast %cst_7 : f32 to vector<16x128xf32>
    %31 = arith.mulf %30, %10 : vector<16x128xf32>
    %32 = arith.mulf %31, %17 : vector<16x128xf32>
    %cst_8 = arith.constant 3.300000e-01 : f32
    %33 = vector.broadcast %cst_8 : f32 to vector<16x128xf32>
    %34 = arith.mulf %33, %15 : vector<16x128xf32>
    %35 = arith.mulf %34, %19 : vector<16x128xf32>
    %36 = arith.subf %32, %35 : vector<16x128xf32>
    %cst_9 = arith.constant 3.000000e-01 : f32
    %37 = vector.broadcast %cst_9 : f32 to vector<16x128xf32>
    %38 = arith.mulf %37, %10 : vector<16x128xf32>
    %39 = arith.mulf %38, %16 : vector<16x128xf32>
    %cst_10 = arith.constant 3.300000e-01 : f32
    %40 = vector.broadcast %cst_10 : f32 to vector<16x128xf32>
    %41 = arith.mulf %40, %15 : vector<16x128xf32>
    %42 = arith.mulf %41, %18 : vector<16x128xf32>
    %43 = arith.addf %39, %42 : vector<16x128xf32>
    %cst_11 = arith.constant 0.561993957 : f32
    %44 = vector.broadcast %cst_11 : f32 to vector<16x128xf32>
    %45 = arith.subf %24, %44 : vector<16x128xf32>
    %cst_12 = arith.constant 0.20600614 : f32
    %46 = vector.broadcast %cst_12 : f32 to vector<16x128xf32>
    %47 = arith.subf %29, %46 : vector<16x128xf32>
    %48 = arith.mulf %45, %45 : vector<16x128xf32>
    %49 = arith.mulf %47, %47 : vector<16x128xf32>
    %50 = arith.addf %48, %49 : vector<16x128xf32>
    %cst_13 = arith.constant 5.000000e-01 : f32
    %51 = vector.broadcast %cst_13 : f32 to vector<16x128xf32>
    %52 = arith.mulf %51, %50 : vector<16x128xf32>
    %53 = arith.mulf %36, %36 : vector<16x128xf32>
    %54 = arith.mulf %43, %43 : vector<16x128xf32>
    %55 = arith.addf %53, %54 : vector<16x128xf32>
    %cst_14 = arith.constant 5.000000e-02 : f32
    %56 = vector.broadcast %cst_14 : f32 to vector<16x128xf32>
    %57 = arith.mulf %56, %55 : vector<16x128xf32>
    %58 = arith.addf %52, %57 : vector<16x128xf32>
    %59 = arith.index_cast %1 : i32 to index
    %c0_15 = arith.constant 0 : index
    %60 = vector.load %arg2[%59, %c0_15] : memref<16x128xf32, #tpu.memory_space<vmem>>, vector<16x128xf32>
    tpu.vector_store %arg2[%59, %c0_15], %58 {strides = array<i32>} : memref<16x128xf32, #tpu.memory_space<vmem>>, vector<16x128xf32>,
    %c1_i32 = arith.constant 1 : i32
    return
  }
  func.func @transform_0(%arg0: i32) -> (i32, i32, i32) {
    %c0_i32 = arith.constant 0 : i32
    %c0_i32_0 = arith.constant 0 : i32
    %c0_i32_1 = arith.constant 0 : i32
    return %c0_i32, %arg0, %c0_i32_0 : i32, i32, i32
  }
  func.func @transform_1(%arg0: i32) -> (i32, i32) {
    %c0_i32 = arith.constant 0 : i32
    %c0_i32_0 = arith.constant 0 : i32
    return %arg0, %c0_i32 : i32, i32
  }
}

</mosaic_0001>

<bundles_post_ra>
// kernel: tpu_custom_call.1
= control target key start
LH: loop header
LB: loop body
LE: loop exit
PB: predicated region body
PF: predicated region fallthrough
CT: control target
= control target key end

     0   :  { %6 = vsyncpa [#allocation3], 0  ;;  %s1834_s0 = inlined_call_operand.hbm [shape: f32[4,32,128], index: 0, kind: input, shape index: {}]   ;;  %s1835_s1 = inlined_call_operand.hbm [shape: f32[32,128], index: 1, kind: output, shape index: {}]  }
   0x1   :  { %8 = vsyncpa [#allocation3 + $0x1], 0 }
   0x2   :  { %9 = vsyncpa [#allocation4], 0 }
   0x3   :  { %11 = vsyncpa [#allocation4 + $0x1], 0  ;;  %s1399_s6 = smov 0   ;;  %s1401_s7 = smov 0  }
   0x4   :  { %s1403_s8 = smov 0   ;;  %s1405_s9 = smov 0  }
   0x5 LB: > { %s1420_s10 = sadd.s32 4294967295, %s1372_s9   ;;  %s1152_s11 = sadd.s32 4294967294, %s1372_s9   ;;  %s1372_s9 = sphi %s1405_s9, %s1847_s9   ;;  %s1368_s8 = sphi %s1403_s8, %s1846_s8   ;;  %s1364_s7 = sphi %s1401_s7, %s1845_s7   ;;  %s1360_s6 = sphi %s1399_s6, %s1844_s6  }
   0x6   : > { %s1424_s12 = sadd.s32 1, %s1372_s9   ;;  %s24_s13 = sadd.s32 1, %s1368_s8 }
   0x7   : > { %s21_s14 = ssub.s32 %s1372_s9, %s1424_s12  ;;  %p31_p0 = scmp.ne.s32.totalorder %s1368_s8, %s1364_s7 }
   0x8   : > { %p22_p1 = scmp.eq.s32.totalorder %s21_s14, 0  ;;  %p32_p2 = scmp.eq.s32.totalorder %s1372_s9, 0 }
   0x9   : > { %p37_p3 = scmp.ne.s32.totalorder %s1364_s7, %s1360_s6  ;;  %p38_p4 = scmp.eq.s32.totalorder %s1420_s10, 0 }
   0xa   : > { %s1436_s15 = scalar_select %p22_p1, %s1368_s8, %s24_s13  }
   0xb   : > { %p1438_p5 = por %p32_p2, %p31_p0  ;;  %p1442_p6 = por %p38_p4, %p37_p3 }
   0xc   : > { %p61_p7 = scmp.eq.s32.totalorder %s1420_s10, 1  ;;  %p67_p8 = scmp.eq.s32.totalorder %s1152_s11, 1 }
   0xd   : > { %p1154_p11 = scmp.ge.s32.totalorder %s1372_s9, 2 }
   0xe   : > { %p1447_p9 = por %p61_p7, %p31_p0  ;;  %p1451_p10 = por %p67_p8, %p37_p3 }
   0xf   : > { %83 = sbr.rel (%p1154_p11) target bundleno = 35 (0x23), region = 16 }
  0x16   : > { %s87_s20 = sand.u32 1, %s1368_s8   ;;  %s1210_s21 = sshll.u32 %s1372_s9, 8 }
  0x17   : > { %s1155_s22 = sshll.u32 %s87_s20, 6  ;;  %s97_s25 = scalar_lea.hbm %s1834_s0, %s1210_s21 }
  0x18   : > { %s1228_s26 = scalar_select %p1438_p5, [#allocation0], [#allocation8] }
  0x19   : > { %s91_s27 = scalar_lea.vmem [#allocation2], %s1155_s22  ;;  %s1374_s30 = smov 512  }
  0x1a   : > { %s110_s28 = sshll.u32 %s91_s27, 4  ;;  %s102_s29 = sld [smem:[%s1228_s26]]   ;;  %s111_s28 = int_to_ptr.vmem [resolvable:$true] %s110_s28 }
  0x1b   : > { %1229 = sst [smem:[#allocation7]] (%p1438_p5), %s1374_s30  ;;  %s1375_s2 = smov 256  }
  0x1c   : > { %1230 = sst [smem:[#allocation7 + $0x1]] (%p1438_p5), %s1375_s2  ;;  %s1376_s3 = smov 2  }
  0x1d   : > { %1231 = sst [smem:[#allocation7 + $0x2]] (%p1438_p5), %s1376_s3  ;;  %s1377_s4 = smov 128  }
  0x1e   : > { %1232 = sst [smem:[#allocation7 + $0x3]] (%p1438_p5), %s1377_s4  ;;  %s1378_s11 = smov 8  }
  0x1f   : > { %1233 = sst [smem:[#allocation7 + $0x4]] (%p1438_p5), %s1377_s4  ;;  %s88_s14 = scalar_lea.sflag [#allocation3], %s87_s20 }
  0x20   : > { %s1158_s5 = sshll.u32 %s102_s29, 26  ;;  %1234 = sst [smem:[#allocation7 + $0x5]] (%p1438_p5), %s1378_s11 }
  0x21   : > { %s1159_s13 = sadd.s32 134217728, %s1158_s5  ;;  %s1379_s21 = smov [#allocation6]  }
  0x22   : > { %1235 = dma.general (%p1438_p5), %s97_s25, 1024, %s111_s28, %s88_s14, %s1379_s21, [#allocation7], %s1159_s13, 0  }
  0x23 PF: > { %p1160_p12 = scmp.ge.s32.totalorder %s1372_s9, 1  ;;  %p131_p13 = scmp.lt.s32.totalorder %s1372_s9, 3 }
  0x25   : > { %p132_p0 = pnand %p1160_p12, %p131_p13 }
  0x26   : > { %s1482_s22 = sand.u32 (!%p132_p0), 1, %s1364_s7  }
  0x27   : > { %135 = sbr.rel (%p132_p0) target bundleno = 208 (0xd0), region = 24  ;;  %s1161_s23 = sshll.u32 (!%p132_p0), %s1482_s22, 6 }
  0x28   : > { %s138_s24 = scalar_lea.sflag (!%p132_p0), [#allocation3], %s1482_s22  ;;  %s1486_s26 = scalar_lea.vmem (!%p132_p0), [#allocation2], %s1161_s23 }
  0x2e   : > { %1351 = dma.done.wait (%p1442_p6), %s138_s24, 1024  }
  0x2f   : > { %1353 = vsyncadd (%p1442_p6), %s138_s24, 4294966272  ;;  %v1493_v0 = vld [vmem:[%s1486_s26] sm:$0xff]  ;;  %v1163_v1 = vld [vmem:[%s1486_s26 + $0x10] sm:$0xff]  ;;  %v1380_v28 = vmov 683565275   ;;  %s1162_s16 = sshll.u32 %s1482_s22, 4 }
  0x30   : > { %v1497_v2 = vld [vmem:[%s1486_s26 + $0x8] sm:$0xff]  ;;  %v180_v3 = vand.u32 2147483647, %v1493_v0  ;;  %v1501_v4 = vadd.f32 %v1163_v1, %v1493_v0  ;;  %v183_v5 = vand.u32 2139095040, %v1493_v0  ;;  %v1381_v30 = vmov 2475754826  }
  0x31   : > { %v283_v6 = vand.u32 2147483647, %v1497_v2  ;;  %v286_v8 = vand.u32 2139095040, %v1497_v2  ;;  %v1382_v32 = vmov 2131351028   ;;  %s1777_s17 = scalar_lea.vmem [#allocation5], %s1162_s16 }
  0x32   : > { %v184_v7 = vshrl.u32 %v183_v5, 23  ;;  %v187_v9 = vand.u32 8388607, %v180_v3  ;;  %v597_v13 = vand.u32 2139095040, %v1501_v4  ;;  %v1383_v34 = vmov 2102212464  }
  0x33   : > { %v290_v10 = vand.u32 8388607, %v283_v6  ;;  %v287_v12 = vshrl.u32 %v286_v8, 23  ;;  %v1384_v36 = vmov 920167782   ;;  %s1211_s20 = sshll.u32 %s1420_s10, 8 }
  0x34   : > { %v1169_v11 = vadd.s32 4294967169, %v184_v7  ;;  %v598_v16 = vshrl.u32 %v597_v13, 23  ;;  %v188_v17 = vor.u32 8388608, %v187_v9  ;;  %v1385_v44 = vmov 1326507024   ;;  %s1076_s25 = sshll.u32 %s1777_s17, 4  ;;  %s1787_s29 = scalar_lea.hbm %s1835_s1, %s1211_s20  ;;  %s1789_s25 = int_to_ptr.vmem [resolvable:$true] %s1076_s25 }
  0x35   : > { %v1173_v15 = vadd.s32 4294967169, %v287_v12  ;;  %v291_v18 = vor.u32 8388608, %v290_v10  ;;  %s1063_s30 = scalar_lea.sflag [#allocation4], %s1482_s22  ;;  %s1306_s2 = scalar_lea.vmem %s1789_s25, 256 }
  0x36   : > { %v190_v14 = vadd.s32 1, %v1169_v11  ;;  %v1185_v20 = vadd.s32 4294967169, %v598_v16  ;;  %v1511_v24 = vshll.u32 %v188_v17, 8  ;;  %p1307_p1 = scmp.ne.s32.totalorder %s1789_s25, %s1306_s2  ;;  %s1386_s10 = smov [#allocation5]  }
  0x37   : > { %v293_v19 = vadd.s32 1, %v1173_v15  ;;  %v1513_v25 = vshll.u32 %v291_v18, 8  ;;  %s1310_s3 = sshll.u32 %s1386_s10, 4  ;;  %s1311_s3 = int_to_ptr.vmem [resolvable:$false] %s1310_s3 }
  0x38   : > { %vm191_vm0 = vcmp.gt.s32.totalorder %v190_v14, 0  ;;  %v1515_v26 = vadd.s32 1, %v1185_v20  ;;  %p1308_p2 = pnand %p1307_p1, %p1447_p9  ;;  %s1312_s4 = scalar_lea.vmem %s1311_s3, 512 }
  0x39   : > { %v192_v21 = vsel %vm191_vm0, %v190_v14, 0  ;;  %vm294_vm1 = vcmp.gt.s32.totalorder %v293_v19, 0  ;;  %p1313_p4 = scmp.lt.s32.totalorder %s1789_s25, %s1311_s3  ;;  %p1314_p5 = scmp.lt.s32.totalorder %s1312_s4, %s1306_s2 }
  0x3a   : > { %v193_v22 = vshrl.u32 %v192_v21, 5  ;;  %v194_v23 = vand.u32 31, %v192_v21  ;;  %v295_v38 = vsel %vm294_vm1, %v293_v19, 0  ;;  %vm605_vm8 = vcmp.gt.s32.totalorder %v1515_v26, 0  ;;  %p1309_p3 = pneg %p1308_p2 }
  0x3b   : > { %v296_v51 = vshrl.u32 %v295_v38, 5  ;;  %v297_v52 = vand.u32 31, %v295_v38  ;;  %p1315_p6 = por %p1314_p5, %p1313_p4 }
  0x3c   : > { %v195_v27 = vsub.s32 32, %v194_v23  ;;  %v197_v29 = vshll.u32 %v1380_v28, %v194_v23  ;;  %v200_v31 = vshll.u32 %v1381_v30, %v194_v23  ;;  %v203_v33 = vshll.u32 %v1382_v32, %v194_v23 }
  0x3d   : > { %v206_v35 = vshll.u32 %v1383_v34, %v194_v23  ;;  %v209_v37 = vshll.u32 %v1384_v36, %v194_v23  ;;  %vm212_vm2 = vcmp.lt.s32.totalorder %v193_v22, 1  ;;  %vm213_vm3 = vcmp.lt.s32.totalorder %v193_v22, 2  ;;  %p1316_p7 = pnand %p1315_p6, %p1309_p3 }
  0x3e   : > { %v196_v39 = vshrl.u32 %v1380_v28, %v195_v27  ;;  %v198_v40 = vshrl.u32 %v1381_v30, %v195_v27  ;;  %v201_v41 = vshrl.u32 %v1382_v32, %v195_v27  ;;  %v204_v42 = vshrl.u32 %v1383_v34, %v195_v27 }
  0x3f   : > { %v207_v43 = vshrl.u32 %v1384_v36, %v195_v27  ;;  %v210_v45 = vshrl.u32 %v1385_v44, %v195_v27  ;;  %vm214_vm4 = vcmp.lt.s32.totalorder %v193_v22, 3  ;;  %vm215_vm5 = vcmp.lt.s32.totalorder %v193_v22, 4 }
  0x40   : > { %v199_v46 = vor.u32 %v198_v40, %v197_v29  ;;  %v202_v47 = vor.u32 %v201_v41, %v200_v31  ;;  %v205_v48 = vor.u32 %v204_v42, %v203_v33  ;;  %v298_v60 = vsub.s32 32, %v297_v52 }
  0x41   : > { %v208_v49 = vor.u32 %v207_v43, %v206_v35  ;;  %v211_v50 = vor.u32 %v210_v45, %v209_v37  ;;  %v300_v1 = vshll.u32 %v1380_v28, %v297_v52  ;;  %v303_v15 = vshll.u32 %v1381_v30, %v297_v52  ;;  %v1164_v43 = vld [vmem:[%s1486_s26 + $0x18] sm:$0xff] }
  0x42   : > { %v216_v53 = vsel %vm212_vm2, %v196_v39, %v199_v46  ;;  %v217_v54 = vsel %vm215_vm5, %v205_v48, 2102212464  ;;  %v220_v55 = vsel %vm212_vm2, %v199_v46, %v202_v47  ;;  %v224_v56 = vsel %vm212_vm2, %v202_v47, %v205_v48 }
  0x43   : > { %v218_v57 = vsel %vm214_vm4, %v202_v47, %v217_v54  ;;  %v221_v58 = vsel %vm215_vm5, %v208_v49, 920167782  ;;  %v225_v59 = vsel %vm215_vm5, %v211_v50, 1326507024  ;;  %v299_v9 = vshrl.u32 %v1380_v28, %v298_v60 }
  0x44   : > { %v219_v61 = vsel %vm213_vm3, %v216_v53, %v218_v57  ;;  %v222_v62 = vsel %vm214_vm4, %v205_v48, %v221_v58  ;;  %v226_v63 = vsel %vm214_vm4, %v208_v49, %v225_v59  ;;  %v301_v14 = vshrl.u32 %v1381_v30, %v298_v60 }
  0x45   : > { %v223_v5 = vsel %vm213_vm3, %v220_v55, %v222_v62  ;;  %v227_v7 = vsel %vm213_vm3, %v224_v56, %v226_v63  ;;  %v235_v8 = vmul.u32 %v1511_v24, %v219_v61  ;;  %v304_v16 = vshrl.u32 %v1382_v32, %v298_v60 }
  0x46   : > { %v1542_v10 = vmul.u32.u64.low %v1511_v24, %v227_v7  ;;  %v1543_v11 = vmul.u32.u64.high %v1511_v24, %v227_v7, %v1542_v10  ;;  %v1546_v12 = vmul.u32.u64.low %v1511_v24, %v223_v5  ;;  %v1547_v13 = vmul.u32.u64.high %v1511_v24, %v223_v5, %v1546_v12 }
  0x47   : > { %v306_v17 = vshll.u32 %v1382_v32, %v297_v52  ;;  %v307_v18 = vshrl.u32 %v1383_v34, %v298_v60  ;;  %v309_v19 = vshll.u32 %v1383_v34, %v297_v52  ;;  %v310_v20 = vshrl.u32 %v1384_v36, %v298_v60 }
  0x48   : > { %v312_v21 = vshll.u32 %v1384_v36, %v297_v52  ;;  %v302_v22 = vor.u32 %v301_v14, %v300_v1  ;;  %v305_v23 = vor.u32 %v304_v16, %v303_v15  ;;  %v313_v24 = vshrl.u32 %v1385_v44, %v298_v60 }
  0x49   : > { %vm315_vm6 = vcmp.lt.s32.totalorder %v296_v51, 1  ;;  %vm237_vm7 = vc.u32 %v1543_v11, %v1546_v12  ;;  %v238_v27 = vadd.s32 1, %v1547_v13  ;;  %v308_v29 = vor.u32 %v307_v18, %v306_v17 }
  0x4a   : > { %v311_v31 = vor.u32 %v310_v20, %v309_v19  ;;  %v314_v33 = vor.u32 %v313_v24, %v312_v21  ;;  %vm316_vm9 = vcmp.lt.s32.totalorder %v296_v51, 2  ;;  %vm317_vm10 = vcmp.lt.s32.totalorder %v296_v51, 3 }
  0x4b   : > { %v239_v35 = vsel %vm237_vm7, %v238_v27, %v1547_v13  ;;  %vm318_vm11 = vcmp.lt.s32.totalorder %v296_v51, 4  ;;  %v319_v37 = vsel %vm315_vm6, %v299_v9, %v302_v22  ;;  %v323_v38 = vsel %vm315_vm6, %v302_v22, %v305_v23 }
  0x4c   : > { %v240_v39 = vadd.s32 %v239_v35, %v235_v8  ;;  %v320_v40 = vsel %vm318_vm11, %v308_v29, 2102212464  ;;  %v324_v41 = vsel %vm318_vm11, %v311_v31, 920167782  ;;  %v327_v42 = vsel %vm315_vm6, %v305_v23, %v308_v29 }
  0x4d   : > { %v321_v45 = vsel %vm317_vm10, %v305_v23, %v320_v40  ;;  %v325_v46 = vsel %vm317_vm10, %v308_v29, %v324_v41  ;;  %v328_v47 = vsel %vm318_vm11, %v314_v33, 1326507024  ;;  %v606_v52 = vsel %vm605_vm8, %v1515_v26, 0 }
  0x4e   : > { %v241_v48 = vadd.s32 536870912, %v240_v39  ;;  %v326_v49 = vsel %vm316_vm9, %v323_v38, %v325_v46  ;;  %v329_v50 = vsel %vm317_vm10, %v311_v31, %v328_v47  ;;  %v322_v53 = vsel %vm316_vm9, %v319_v37, %v321_v45 }
  0x4f   : > { %v330_v54 = vsel %vm316_vm9, %v327_v42, %v329_v50  ;;  %v1575_v55 = vmul.u32.u64.low %v1513_v25, %v326_v49  ;;  %v1576_v56 = vmul.u32.u64.high %v1513_v25, %v326_v49, %v1575_v55  ;;  %v1580_v57 = vadd.f32 %v1164_v43, %v1497_v2 }
  0x50   : > { %v1582_v58 = vshrl.u32 %v241_v48, 30  ;;  %v1585_v59 = vmul.u32.u64.low %v1513_v25, %v330_v54  ;;  %v1586_v60 = vmul.u32.u64.high %v1513_v25, %v330_v54, %v1585_v59  ;;  %v608_v61 = vand.u32 31, %v606_v52 }
  0x51   : > { %v338_v51 = vmul.u32 %v1513_v25, %v322_v53  ;;  %v341_v62 = vadd.s32 1, %v1576_v56  ;;  %v594_v1 = vand.u32 2147483647, %v1501_v4  ;;  %v700_v5 = vand.u32 2139095040, %v1580_v57 }
  0x52   : > { %v243_v26 = vshll.u32 %v1582_v58, 30  ;;  %vm340_vm12 = vc.u32 %v1586_v60, %v1575_v55  ;;  %v609_v8 = vsub.s32 32, %v608_v61  ;;  %v607_v14 = vshrl.u32 %v606_v52, 5 }
  0x53   : > { %v342_v7 = vsel %vm340_vm12, %v341_v62, %v1576_v56  ;;  %v601_v25 = vand.u32 8388607, %v594_v1  ;;  %v701_v15 = vshrl.u32 %v700_v5, 23  ;;  %v611_v17 = vshll.u32 %v1380_v28, %v608_v61 }
  0x54   : > { %v1591_v63 = vsub.s32 %v240_v39, %v243_v26  ;;  %v343_v10 = vadd.s32 %v342_v7, %v338_v51  ;;  %v612_v18 = vshrl.u32 %v1381_v30, %v609_v8  ;;  %v614_v19 = vshll.u32 %v1381_v30, %v608_v61 }
  0x55   : > { %v615_v21 = vshrl.u32 %v1382_v32, %v609_v8  ;;  %v620_v22 = vshll.u32 %v1383_v34, %v608_v61  ;;  %v621_v23 = vshrl.u32 %v1384_v36, %v609_v8  ;;  %v617_v27 = vshll.u32 %v1382_v32, %v608_v61 }
  0x56   : > { %v246_v9 = vsub.s32 0, %v1591_v63  ;;  %v344_v16 = vadd.s32 536870912, %v343_v10  ;;  %v618_v29 = vshrl.u32 %v1383_v34, %v609_v8  ;;  %v236_v31 = vadd.s32 %v1546_v12, %v1543_v11 }
  0x57   : > { %v602_v35 = vor.u32 8388608, %v601_v25  ;;  %v1189_v37 = vadd.s32 4294967169, %v701_v15  ;;  %v623_v39 = vshll.u32 %v1384_v36, %v608_v61  ;;  %v624_v40 = vshrl.u32 %v1385_v44, %v609_v8 }
  0x58   : > { %v1170_v13 = vmin.u32 %v246_v9, %v1591_v63  ;;  %v1608_v24 = vshrl.u32 %v344_v16, 30  ;;  %vm626_vm13 = vcmp.lt.s32.totalorder %v607_v14, 1  ;;  %v613_v41 = vor.u32 %v612_v18, %v611_v17 }
  0x59   : > { %v616_v42 = vor.u32 %v615_v21, %v614_v19  ;;  %v622_v43 = vor.u32 %v621_v23, %v620_v22  ;;  %v619_v47 = vor.u32 %v618_v29, %v617_v27  ;;  %vm629_vm15 = vcmp.lt.s32.totalorder %v607_v14, 4 }
  0x5a   : > { %v248_v20 = vclz %v1170_v13  ;;  %v346_v38 = vshll.u32 %v1608_v24, 30  ;;  %v610_v48 = vshrl.u32 %v1380_v28, %v609_v8  ;;  %v642_v49 = vshll.u32 %v602_v35, 8 }
  0x5b   : > { %v625_v52 = vor.u32 %v624_v40, %v623_v39  ;;  %vm628_vm0 = vcmp.lt.s32.totalorder %v607_v14, 3  ;;  %v631_v53 = vsel %vm629_vm15, %v619_v47, 2102212464  ;;  %vm627_vm1 = vcmp.lt.s32.totalorder %v607_v14, 2 }
  0x5c   : > { %v1171_v33 = vadd.s32 4294967294, %v248_v20  ;;  %v1617_v46 = vsub.s32 %v343_v10, %v346_v38  ;;  %v634_v56 = vsel %vm626_vm13, %v613_v41, %v616_v42  ;;  %v635_v59 = vsel %vm629_vm15, %v622_v43, 920167782 }
  0x5d   : > { %v707_v62 = vadd.s32 1, %v1189_v37  ;;  %v630_v7 = vsel %vm626_vm13, %v610_v48, %v613_v41  ;;  %v632_v8 = vsel %vm628_vm0, %v616_v42, %v631_v53  ;;  %v636_v9 = vsel %vm628_vm0, %v619_v47, %v635_v59 }
  0x5e   : > { %vm1172_vm14 = vcmp.lt.s32.totalorder %v1171_v33, 0  ;;  %v349_v50 = vsub.s32 0, %v1617_v46  ;;  %v637_v13 = vsel %vm627_vm1, %v634_v56, %v636_v9  ;;  %v638_v25 = vsel %vm626_vm13, %v616_v42, %v619_v47 }
  0x5f   : > { %v251_v45 = vsel %vm1172_vm14, 0, %v1171_v33  ;;  %v639_v15 = vsel %vm629_vm15, %v625_v52, 1326507024  ;;  %vm708_vm2 = vcmp.gt.s32.totalorder %v707_v62, 0  ;;  %vm182_vm5 = vcmp.lt.s32.totalorder %v1493_v0, 0 }
  0x60   : > { %v252_v11 = vsub.s32 32, %v251_v45  ;;  %v256_v12 = vsub.s32 4294967266, %v251_v45  ;;  %v253_v61 = vshll.u32 %v1591_v63, %v251_v45  ;;  %v1174_v51 = vmin.u32 %v349_v50, %v1617_v46 }
  0x61   : > { %v633_v63 = vsel %vm627_vm1, %v630_v7, %v632_v8  ;;  %v640_v17 = vsel %vm628_vm0, %v622_v43, %v639_v15  ;;  %v1635_v20 = vmul.u32.u64.low %v642_v49, %v637_v13  ;;  %v1636_v21 = vmul.u32.u64.high %v642_v49, %v637_v13, %v1635_v20 }
  0x62   : > { %v257_v54 = vadd.s32 127, %v256_v12  ;;  %v254_v26 = vshrl.u32 %v236_v31, %v252_v11  ;;  %v351_v10 = vclz %v1174_v51  ;;  %v641_v19 = vsel %vm627_vm1, %v638_v25, %v640_v17 }
  0x63   : > { %v1639_v23 = vmul.u32.u64.low %v642_v49, %v641_v19  ;;  %v1640_v27 = vmul.u32.u64.high %v642_v49, %v641_v19, %v1639_v23  ;;  %v709_v29 = vsel %vm708_vm2, %v707_v62, 0  ;;  %v649_v33 = vmul.u32 %v642_v49, %v633_v63 }
  0x64   : > { %v258_v5 = vshll.u32 %v257_v54, 23  ;;  %v255_v16 = vor.u32 %v254_v26, %v253_v61  ;;  %v1175_v22 = vadd.s32 4294967294, %v351_v10  ;;  %v711_v31 = vand.u32 31, %v709_v29 }
  0x65   : > { %v652_v38 = vadd.s32 1, %v1636_v21  ;;  %vm651_vm4 = vc.u32 %v1640_v27, %v1635_v20  ;;  %v697_v43 = vand.u32 2147483647, %v1580_v57  ;;  %v710_v47 = vshrl.u32 %v709_v29, 5 }
  0x66   : > { %v259_v18 = vor.u32 4788187, %v258_v5  ;;  %v262_v37 = vcvt.s32.f32 %v255_v16  ;;  %vm1176_vm3 = vcmp.lt.s32.totalorder %v1175_v22, 0  ;;  %v712_v14 = vsub.s32 32, %v711_v31 }
  0x67   : > { %v653_v39 = vsel %vm651_vm4, %v652_v38, %v1636_v21  ;;  %v1646_v42 = vsel %vm1176_vm3, 0, %v1175_v22  ;;  %v714_v11 = vshll.u32 %v1380_v28, %v711_v31  ;;  %v717_v48 = vshll.u32 %v1381_v30, %v711_v31 }
  0x68   : > { %v260_v35 = vand.u32 2147483647, %v259_v18  ;;  %v654_v40 = vadd.s32 %v653_v39, %v649_v33  ;;  %v715_v12 = vshrl.u32 %v1381_v30, %v712_v14  ;;  %v718_v49 = vshrl.u32 %v1382_v32, %v712_v14 }
  0x69   : > { %v720_v50 = vshll.u32 %v1382_v32, %v711_v31  ;;  %v723_v52 = vshll.u32 %v1383_v34, %v711_v31  ;;  %v721_v54 = vshrl.u32 %v1383_v34, %v712_v14  ;;  %v724_v56 = vshrl.u32 %v1384_v36, %v712_v14 }
  0x6a   : > { %v263_v41 = vmul.f32 %v262_v37, %v260_v35  ;;  %v655_v45 = vadd.s32 536870912, %v654_v40  ;;  %v726_v59 = vshll.u32 %v1384_v36, %v711_v31  ;;  %v704_v61 = vand.u32 8388607, %v697_v43 }
  0x6b   : > { %v727_v26 = vshrl.u32 %v1385_v44, %v712_v14  ;;  %v359_v30 = vsub.s32 4294967266, %v1646_v42  ;;  %v725_v51 = vor.u32 %v724_v56, %v723_v52  ;;  %vm1668_vm6 = vcmp.le.f32.partialorder %v180_v3, 0.7853982 }
  0x6c   : > { %v1655_v53 = vshrl.u32 %v655_v45, 30  ;;  %v264_v62 = vxor.u32 2147483648, %v263_v41  ;;  %v716_v36 = vor.u32 %v715_v12, %v714_v11  ;;  %vm732_vm7 = vcmp.lt.s32.totalorder %v710_v47, 4 }
  0x6d   : > { %v719_v7 = vor.u32 %v718_v49, %v717_v48  ;;  %v722_v8 = vor.u32 %v721_v54, %v720_v50  ;;  %v728_v44 = vor.u32 %v727_v26, %v726_v59  ;;  %v705_v9 = vor.u32 8388608, %v704_v61 }
  0x6e   : > { %v657_v32 = vshll.u32 %v1655_v53, 30  ;;  %vm729_vm8 = vcmp.lt.s32.totalorder %v710_v47, 1  ;;  %vm731_vm9 = vcmp.lt.s32.totalorder %v710_v47, 3  ;;  %v738_v10 = vsel %vm732_vm7, %v725_v51, 920167782 }
  0x6f   : > { %v339_v13 = vadd.s32 %v1575_v55, %v1586_v60  ;;  %v355_v3 = vsub.s32 32, %v1646_v42  ;;  %v360_v25 = vadd.s32 127, %v359_v30  ;;  %v265_v16 = vsel %vm182_vm5, %v264_v62, %v263_v41 }
  0x70   : > { %v658_v5 = vsub.s32 %v654_v40, %v657_v32  ;;  %v713_v63 = vshrl.u32 %v1380_v28, %v712_v14  ;;  %vm730_vm10 = vcmp.lt.s32.totalorder %v710_v47, 2  ;;  %v734_v17 = vsel %vm732_vm7, %v722_v8, 2102212464 }
  0x71   : > { %v737_v19 = vsel %vm729_vm8, %v716_v36, %v719_v7  ;;  %v739_v21 = vsel %vm731_vm9, %v722_v8, %v738_v10  ;;  %v742_v22 = vsel %vm732_vm7, %v728_v44, 1326507024  ;;  %v266_v55 = vsub.s32 4, %v1582_v58 }
  0x72   : > { %v660_v15 = vsub.s32 0, %v658_v5  ;;  %v741_v60 = vsel %vm729_vm8, %v719_v7, %v722_v8  ;;  %v745_v23 = vshll.u32 %v705_v9, 8  ;;  %v268_v29 = vsel %vm1668_vm6, %v1493_v0, %v265_v16 }
  0x73   : > { %v356_v28 = vshll.u32 %v1617_v46, %v1646_v42  ;;  %v357_v31 = vshrl.u32 %v339_v13, %v355_v3  ;;  %v733_v35 = vsel %vm729_vm8, %v713_v63, %v716_v36  ;;  %v735_v37 = vsel %vm731_vm9, %v719_v7, %v734_v17 }
  0x74   : > { %v1186_v18 = vmin.u32 %v660_v15, %v658_v5  ;;  %v740_v38 = vsel %vm730_vm10, %v737_v19, %v739_v21  ;;  %v743_v14 = vsel %vm731_vm9, %v725_v51, %v742_v22  ;;  %v361_v39 = vshll.u32 %v360_v25, 23 }
  0x75   : > { %v744_v41 = vsel %vm730_vm10, %v741_v60, %v743_v14  ;;  %1290 = vcosq.f32 %v268_v29  ;;  %v650_v45 = vadd.s32 %v1635_v20, %v1640_v27  ;;  %v736_v42 = vsel %vm730_vm10, %v733_v35, %v735_v37  ;;  %v1165_v14 = vld [vmem:[%s1486_s26 + $0x20] sm:$0xff] }
  0x76   : > { %v662_v33 = vclz %v1186_v18  ;;  %v1697_v11 = vmul.u32.u64.low %v745_v23, %v744_v41  ;;  %v1698_v46 = vmul.u32.u64.high %v745_v23, %v744_v41, %v1697_v11  ;;  %v267_v49 = vsel %vm182_vm5, %v266_v55, %v1582_v58 }
  0x77   : > { %v1701_v12 = vmul.u32.u64.low %v745_v23, %v740_v38  ;;  %v1702_v48 = vmul.u32.u64.high %v745_v23, %v740_v38, %v1701_v12  ;;  %1292 = vsinq.f32 %v268_v29  ;;  %v358_v50 = vor.u32 %v357_v31, %v356_v28 }
  0x78   : > { %v1187_v40 = vadd.s32 4294967294, %v662_v33  ;;  %v362_v54 = vor.u32 4788187, %v361_v39  ;;  %v752_v59 = vmul.u32 %v745_v23, %v736_v42  ;;  %v269_v30 = vsel %vm1668_vm6, 0, %v267_v49  ;;  %v1167_v39 = vld [vmem:[%s1486_s26 + $0x30] sm:$0xff] }
  0x79   : > { %vm754_vm12 = vc.u32 %v1698_v46, %v1701_v12  ;;  %v755_v26 = vadd.s32 1, %v1702_v48  ;;  %v365_v32 = vcvt.s32.f32 %v358_v50  ;;  %v479_v9 = vadd.s32 3, %v269_v30 }
  0x7a   : > { %vm1188_vm11 = vcmp.lt.s32.totalorder %v1187_v40, 0  ;;  %v363_v58 = vand.u32 2147483647, %v362_v54  ;;  %v680_v25 = vsub.s32 4, %v1655_v53  ;;  %v273_v34 = vand.u32 3, %v269_v30 }
  0x7b   : > { %v665_v52 = vsel %vm1188_vm11, 0, %v1187_v40  ;;  %v756_v36 = vsel %vm754_vm12, %v755_v26, %v1702_v48  ;;  %vm285_vm13 = vcmp.lt.s32.totalorder %v1497_v2, 0  ;;  %v480_v17 = vand.u32 3, %v479_v9 }
  0x7c   : > { %v666_v56 = vsub.s32 32, %v665_v52  ;;  %v667_v20 = vshll.u32 %v658_v5, %v665_v52  ;;  %v670_v27 = vsub.s32 4294967266, %v665_v52  ;;  %v757_v7 = vadd.s32 %v756_v36, %v752_v59 }
  0x7d   : > { %v366_v13 = vmul.f32 %v365_v32, %v363_v58  ;;  %vm596_vm14 = vcmp.lt.s32.totalorder %v1501_v4, 0  ;;  %vm595_vm15 = vcmp.le.f32.partialorder %v594_v1, 0.7853982  ;;  %vm1725_vm0 = vcmp.le.f32.partialorder %v283_v6, 0.7853982 }
  0x7e   : > { %v668_v47 = vshrl.u32 %v650_v45, %v666_v56  ;;  %v671_v61 = vadd.s32 127, %v670_v27  ;;  %v758_v10 = vadd.s32 536870912, %v757_v7  ;;  %v681_v22 = vsel %vm596_vm14, %v680_v25, %v1655_v53 }
  0x7f   : > { %v1291_v44 = vpop.eup %1290  ;;  %v367_v19 = vxor.u32 2147483648, %v366_v13  ;;  %vm274_vm1 = vcmp.lt.s32.totalorder %v273_v34, 2  ;;  %vm275_vm2 = vcmp.eq.s32.totalorder %v273_v34, 0  ;;  %vm278_vm3 = vcmp.eq.s32.totalorder %v273_v34, 2 }
  0x80   : > { %v669_v51 = vor.u32 %v668_v47, %v667_v20  ;;  %v672_v62 = vshll.u32 %v671_v61, 23  ;;  %v1715_v16 = vshrl.u32 %v758_v10, 30  ;;  %v279_v60 = vxor.u32 2147483648, %v1291_v44 }
  0x81   : > { %v1293_v15 = vpop.eup %1292  ;;  %vm482_vm4 = vcmp.eq.s32.totalorder %v480_v17, 0  ;;  %v683_v53 = vsel %vm595_vm15, 0, %v681_v22  ;;  %v368_v6 = vsel %vm285_vm13, %v367_v19, %v366_v13  ;;  %v369_v33 = vsub.s32 4, %v1608_v24 }
  0x82   : > { %v673_v5 = vor.u32 4788187, %v672_v62  ;;  %v676_v8 = vcvt.s32.f32 %v669_v51  ;;  %v760_v18 = vshll.u32 %v1715_v16, 30  ;;  %v276_v55 = vxor.u32 2147483648, %v1293_v15 }
  0x83   : > { %vm485_vm5 = vcmp.eq.s32.totalorder %v480_v17, 2  ;;  %v280_v37 = vsel %vm278_vm3, %v279_v60, %v1293_v15  ;;  %v893_v40 = vadd.s32 3, %v683_v53  ;;  %vm272_vm6 = vweird.f32 %v1493_v0 }
  0x84   : > { %v674_v3 = vand.u32 2147483647, %v673_v5  ;;  %v1729_v29 = vsub.s32 %v757_v7, %v760_v18  ;;  %v277_v35 = vsel %vm275_vm2, %v1291_v44, %v276_v55  ;;  %v371_v41 = vsel %vm1725_vm0, %v1497_v2, %v368_v6 }
  0x85   : > { %vm481_vm7 = vcmp.lt.s32.totalorder %v480_v17, 2  ;;  %v281_v11 = vsel %vm274_vm1, %v277_v35, %v280_v37  ;;  %v484_v42 = vsel %vm482_vm4, %v1291_v44, %v276_v55  ;;  %v487_v48 = vsel %vm485_vm5, %v279_v60, %v1293_v15 }
  0x86   : > { %v677_v63 = vmul.f32 %v676_v8, %v674_v3  ;;  %v763_v31 = vsub.s32 0, %v1729_v29  ;;  %v687_v49 = vand.u32 3, %v683_v53  ;;  %v178_v50 = vadd.f32 %v1167_v39, %v1165_v14 }
  0x87   : > { %v370_v52 = vsel %vm285_vm13, %v369_v33, %v1608_v24  ;;  %vm686_vm8 = vweird.f32 %v1501_v4  ;;  %v894_v56 = vand.u32 3, %v893_v40  ;;  %v1020_v20 = vmul.f32 -0.3, %v1165_v14 }
  0x88   : > { %v678_v21 = vxor.u32 2147483648, %v677_v63  ;;  %v1190_v38 = vmin.u32 %v763_v31, %v1729_v29  ;;  %v282_v27 = vsel %vm272_vm6, nan, %v281_v11  ;;  %v488_v59 = vsel %vm481_vm7, %v484_v42, %v487_v48 }
  0x89   : > { %v753_v47 = vadd.s32 %v1701_v12, %v1698_v46  ;;  %v372_v61 = vsel %vm1725_vm0, 0, %v370_v52  ;;  %vm688_vm10 = vcmp.lt.s32.totalorder %v687_v49, 2  ;;  %vm689_vm11 = vcmp.eq.s32.totalorder %v687_v49, 0 }
  0x8a   : > { %v679_v28 = vsel %vm596_vm14, %v678_v21, %v677_v63  ;;  %v765_v45 = vclz %v1190_v38  ;;  %v489_v51 = vsel %vm272_vm6, nan, %v488_v59  ;;  %vm692_vm12 = vcmp.eq.s32.totalorder %v687_v49, 2 }
  0x8b   : > { %v682_v1 = vsel %vm595_vm15, %v1501_v4, %v679_v28  ;;  %vm899_vm13 = vcmp.eq.s32.totalorder %v894_v56, 2  ;;  %v1008_v62 = vmul.f32 0.3, %v282_v27  ;;  %vm896_vm14 = vcmp.eq.s32.totalorder %v894_v56, 0 }
  0x8c   : > { %1294 = vcosq.f32 %v682_v1  ;;  %v1191_v54 = vadd.s32 4294967294, %v765_v45  ;;  %vm895_vm15 = vcmp.lt.s32.totalorder %v894_v56, 2  ;;  %v1024_v8 = vmul.f32 0.33, %v178_v50 }
  0x8d   : > { %1296 = vsinq.f32 %v682_v1  ;;  %v1030_v44 = vmul.f32 0.3, %v1165_v14  ;;  %v1014_v15 = vmul.f32 0.3, %v489_v51  ;;  %v1022_v34 = vmul.f32 %v1020_v20, %v489_v51 }
  0x8e   : > { %1298 = vcosq.f32 %v371_v41  ;;  %vm1192_vm9 = vcmp.lt.s32.totalorder %v1191_v54, 0  ;;  %v783_v55 = vsub.s32 4, %v1715_v16  ;;  %v583_v6 = vadd.s32 3, %v372_v61 }
  0x8f   : > { %1300 = vsinq.f32 %v371_v41  ;;  %v768_v24 = vsel %vm1192_vm9, 0, %v1191_v54  ;;  %v1032_v23 = vmul.f32 %v1030_v44, %v282_v27  ;;  %vm699_vm0 = vcmp.lt.s32.totalorder %v1580_v57, 0 }
  0x90   : > { %v769_v26 = vsub.s32 32, %v768_v24  ;;  %v770_v30 = vshll.u32 %v1729_v29, %v768_v24  ;;  %v773_v32 = vsub.s32 4294967266, %v768_v24  ;;  %vm698_vm1 = vcmp.le.f32.partialorder %v697_v43, 0.7853982 }
  0x91   : > { %v784_v4 = vsel %vm699_vm0, %v783_v55, %v1715_v16  ;;  %v376_v42 = vand.u32 3, %v372_v61  ;;  %v584_v49 = vand.u32 3, %v583_v6 }
  0x92   : > { %v771_v36 = vshrl.u32 %v753_v47, %v769_v26  ;;  %v774_v7 = vadd.s32 127, %v773_v32  ;;  %v786_v56 = vsel %vm698_vm1, 0, %v784_v4 }
  0x93   : > { %vm378_vm2 = vcmp.eq.s32.totalorder %v376_v42, 0  ;;  %vm381_vm3 = vcmp.eq.s32.totalorder %v376_v42, 2  ;;  %vm586_vm4 = vcmp.eq.s32.totalorder %v584_v49, 0  ;;  %vm589_vm5 = vcmp.eq.s32.totalorder %v584_v49, 2 }
  0x94   : > { %v772_v10 = vor.u32 %v771_v36, %v770_v30  ;;  %v775_v13 = vshll.u32 %v774_v7, 23  ;;  %v997_v61 = vadd.s32 3, %v786_v56  ;;  %vm377_vm6 = vcmp.lt.s32.totalorder %v376_v42, 2 }
  0x95   : > { %vm585_vm7 = vcmp.lt.s32.totalorder %v584_v49, 2 }
  0x96   : > { %v1295_v58 = vpop.eup %1294  ;;  %v776_v17 = vor.u32 4788187, %v775_v13  ;;  %v779_v18 = vcvt.s32.f32 %v772_v10  ;;  %v998_v36 = vand.u32 3, %v997_v61 }
  0x97   : > { %v1297_v46 = vpop.eup %1296  ;;  %v693_v12 = vxor.u32 2147483648, %v1295_v58 }
  0x98   : > { %v690_v5 = vxor.u32 2147483648, %v1297_v46  ;;  %v1299_v21 = vpop.eup %1298  ;;  %v777_v29 = vand.u32 2147483647, %v776_v17 }
  0x99   : > { %v694_v9 = vsel %vm692_vm12, %v693_v12, %v1297_v46  ;;  %v901_v3 = vsel %vm899_vm13, %v693_v12, %v1297_v46  ;;  %v1301_v31 = vpop.eup %1300  ;;  %v382_v16 = vxor.u32 2147483648, %v1299_v21  ;;  %v1168_v46 = vld [vmem:[%s1486_s26 + $0x38] sm:$0xff]  ;;  %v790_v12 = vand.u32 3, %v786_v56 }
  0x9a   : > { %v691_v25 = vsel %vm689_vm11, %v1295_v58, %v690_v5  ;;  %v898_v0 = vsel %vm896_vm14, %v1295_v58, %v690_v5  ;;  %v780_v35 = vmul.f32 %v779_v18, %v777_v29  ;;  %v379_v27 = vxor.u32 2147483648, %v1301_v31 }
  0x9b   : > { %v695_v63 = vsel %vm688_vm10, %v691_v25, %v694_v9  ;;  %v902_v19 = vsel %vm895_vm15, %v898_v0, %v901_v3  ;;  %v383_v30 = vsel %vm381_vm3, %v382_v16, %v1301_v31  ;;  %v591_v51 = vsel %vm589_vm5, %v382_v16, %v1301_v31 }
  0x9c   : > { %v696_v22 = vsel %vm686_vm8, nan, %v695_v63  ;;  %v903_v60 = vsel %vm686_vm8, nan, %v902_v19  ;;  %v781_v40 = vxor.u32 2147483648, %v780_v35  ;;  %v380_v26 = vsel %vm378_vm2, %v1299_v21, %v379_v27 }
  0x9d   : > { %v1010_v28 = vmul.f32 0.33, %v696_v22  ;;  %v1016_v1 = vmul.f32 0.33, %v903_v60  ;;  %v1026_v53 = vmul.f32 %v1024_v8, %v903_v60  ;;  %v1034_v33 = vmul.f32 %v1024_v8, %v696_v22 }
  0x9e   : > { %v782_v50 = vsel %vm699_vm0, %v781_v40, %v780_v35  ;;  %v588_v58 = vsel %vm586_vm4, %v1299_v21, %v379_v27  ;;  %vm375_vm8 = vweird.f32 %v1497_v2  ;;  %v384_v7 = vsel %vm377_vm6, %v380_v26, %v383_v30 }
  0x9f   : > { %v1012_v37 = vadd.f32 %v1010_v28, %v1008_v62  ;;  %v1018_v38 = vadd.f32 %v1016_v1, %v1014_v15  ;;  %v1028_v14 = vsub.f32 %v1022_v34, %v1026_v53  ;;  %v1036_v39 = vadd.f32 %v1034_v33, %v1032_v23  ;;  %v1166_v62 = vld [vmem:[%s1486_s26 + $0x28] sm:$0xff] }
  0xa0   : > { %v785_v43 = vsel %vm698_vm1, %v1580_v57, %v782_v50  ;;  %v592_v5 = vsel %vm585_vm7, %v588_v58, %v591_v51  ;;  %v179_v8 = vadd.f32 %v1168_v46, %v1166_v62  ;;  %v1021_v44 = vmul.f32 -0.3, %v1166_v62 }
  0xa1   : > { %v1201_v41 = vadd.f32 -0.56199396, %v1012_v37  ;;  %v1203_v45 = vadd.f32 -0.20600614, %v1018_v38  ;;  %v1050_v11 = vmul.f32 %v1028_v14, %v1028_v14  ;;  %v1052_v48 = vmul.f32 %v1036_v39, %v1036_v39 }
  0xa2   : > { %1302 = vcosq.f32 %v785_v43  ;;  %v385_v10 = vsel %vm375_vm8, nan, %v384_v7  ;;  %vm795_vm9 = vcmp.eq.s32.totalorder %v790_v12, 2  ;;  %vm1003_vm10 = vcmp.eq.s32.totalorder %v998_v36, 2 }
  0xa3   : > { %v1042_v52 = vmul.f32 %v1201_v41, %v1201_v41  ;;  %v1044_v54 = vmul.f32 %v1203_v45, %v1203_v45  ;;  %v1054_v20 = vadd.f32 %v1052_v48, %v1050_v11  ;;  %1304 = vsinq.f32 %v785_v43 }
  0xa4   : > { %v1031_v13 = vmul.f32 0.3, %v1166_v62  ;;  %v593_v25 = vsel %vm375_vm8, nan, %v592_v5  ;;  %vm792_vm11 = vcmp.eq.s32.totalorder %v790_v12, 0  ;;  %vm1000_vm12 = vcmp.eq.s32.totalorder %v998_v36, 0 }
  0xa5   : > { %v1046_v59 = vadd.f32 %v1044_v54, %v1042_v52  ;;  %v1056_v47 = vmul.f32 0.05, %v1054_v20  ;;  %vm791_vm13 = vcmp.lt.s32.totalorder %v790_v12, 2  ;;  %vm999_vm14 = vcmp.lt.s32.totalorder %v998_v36, 2 }
  0xa6   : > { %vm789_vm15 = vweird.f32 %v1580_v57  ;;  %v1025_v63 = vmul.f32 0.33, %v179_v8  ;;  %v1009_v19 = vmul.f32 0.3, %v385_v10  ;;  %v1015_v21 = vmul.f32 0.3, %v593_v25 }
  0xa7   : > { %v1048_v24 = vmul.f32 0.5, %v1046_v59  ;;  %v1023_v60 = vmul.f32 %v1021_v44, %v593_v25  ;;  %v1033_v23 = vmul.f32 %v1031_v13, %v385_v10 }
  0xa9   : > { %v1058_v32 = vadd.f32 %v1056_v47, %v1048_v24 }
  0xab   : > { %1060 = vst [vmem:[%s1777_s17] sm:$0xff] %v1058_v32 }
  0xac   : > { %v1303_v9 = vpop.eup %1302 }
  0xad   : > { %v1305_v3 = vpop.eup %1304  ;;  %v796_v0 = vxor.u32 2147483648, %v1303_v9 }
  0xae   : > { %v793_v15 = vxor.u32 2147483648, %v1305_v3 }
  0xaf   : > { %v797_v2 = vsel %vm795_vm9, %v796_v0, %v1305_v3  ;;  %v1005_v34 = vsel %vm1003_vm10, %v796_v0, %v1305_v3 }
  0xb0   : > { %v794_v17 = vsel %vm792_vm11, %v1303_v9, %v793_v15  ;;  %v1002_v18 = vsel %vm1000_vm12, %v1303_v9, %v793_v15 }
  0xb1   : > { %v798_v22 = vsel %vm791_vm13, %v794_v17, %v797_v2  ;;  %v1006_v55 = vsel %vm999_vm14, %v1002_v18, %v1005_v34 }
  0xb2   : > { %v799_v29 = vsel %vm789_vm15, nan, %v798_v22  ;;  %v1007_v28 = vsel %vm789_vm15, nan, %v1006_v55 }
  0xb3   : > { %v1011_v1 = vmul.f32 0.33, %v799_v29  ;;  %v1017_v53 = vmul.f32 0.33, %v1007_v28  ;;  %v1027_v31 = vmul.f32 %v1025_v63, %v1007_v28  ;;  %v1035_v6 = vmul.f32 %v1025_v63, %v799_v29 }
  0xb5   : > { %v1013_v57 = vadd.f32 %v1011_v1, %v1009_v19  ;;  %v1019_v33 = vadd.f32 %v1017_v53, %v1015_v21  ;;  %v1029_v35 = vsub.f32 %v1023_v60, %v1027_v31  ;;  %v1037_v37 = vadd.f32 %v1035_v6, %v1033_v23 }
  0xb7   : > { %v1202_v38 = vadd.f32 -0.56199396, %v1013_v57  ;;  %v1204_v14 = vadd.f32 -0.20600614, %v1019_v33  ;;  %v1051_v4 = vmul.f32 %v1029_v35, %v1029_v35  ;;  %v1053_v39 = vmul.f32 %v1037_v37, %v1037_v37 }
  0xb9   : > { %v1043_v40 = vmul.f32 %v1202_v38, %v1202_v38  ;;  %v1045_v41 = vmul.f32 %v1204_v14, %v1204_v14  ;;  %v1055_v45 = vadd.f32 %v1053_v39, %v1051_v4 }
  0xbb   : > { %v1047_v11 = vadd.f32 %v1045_v41, %v1043_v40  ;;  %v1057_v42 = vmul.f32 0.05, %v1055_v45 }
  0xbd   : > { %v1049_v48 = vmul.f32 0.5, %v1047_v11 }
  0xbf   : > { %v1059_v49 = vadd.f32 %v1057_v42, %v1049_v48 }
  0xc1   : > { %1061 = vst [vmem:[%s1777_s17 + $0x8] sm:$0xff] %v1059_v49 }
  0xc2   : > { %1319 = shalt.err (!%p1316_p7)
}
  0xc3   : > { %s1320_s5 = scalar_lea.hbm %s1787_s29, 256  ;;  %s1324_s14 = scalar_lea.hbm %s1835_s1, 512 }
  0xc4   : > { %p1321_p8 = scmp.ne.s32.totalorder %s1787_s29, %s1320_s5  ;;  %p1325_p0 = scmp.lt.u32.totalorder %s1787_s29, %s1835_s1 }
  0xc5   : > { %p1326_p1 = scmp.lt.u32.totalorder %s1324_s14, %s1320_s5  ;;  %p1328_p3 = scmp.lt.u32.totalorder %s1320_s5, %s1787_s29 }
  0xc6   : > { %p1322_p12 = pnand %p1321_p8, %p1447_p9 }
  0xc7   : > { %p1327_p2 = por %p1326_p1, %p1325_p0 }
  0xc8   : > { %p1323_p13 = pneg %p1322_p12 }
  0xc9   : > { %p1329_p4 = por %p1328_p3, %p1327_p2 }
  0xcb   : > { %p1330_p5 = pnand %p1329_p4, %p1323_p13 }
  0xcd   : > { %1333 = shalt.err (!%p1330_p5)
}
  0xce   : > { %s1387_s24 = smov 128   ;;  %s1388_s26 = smov 8  }
  0xcf   : > { %1237 = dma.vmem_to_hbm [thread:$0]  (%p1447_p9), %s1789_s25, 256, %s1787_s29, %s1063_s30, %s1387_s24, %s1387_s24, %s1388_s26  }
  0xd0 PF: > { %s1091_s16 = sand.u32 1, %s1360_s6   ;;  %p1240_p6 = pnand %p1154_p11, %p1451_p10 }
  0xd1   : > { %s1092_s17 = scalar_lea.sflag [#allocation4], %s1091_s16 }
  0xd2   : > { %1355 = dma.done.wait (!%p1240_p6), %s1092_s17, 256  }
  0xd3   : > { %1357 = vsyncadd (!%p1240_p6), %s1092_s17, 4294967040  ;;  %p14_p7 = scmp.ge.s32.totalorder %s1424_s12, 4   ;;  %s1844_s6 = smov %s1364_s7 }
  0xd4   : > { %s1845_s7 = smov %s1368_s8  ;;  %s1846_s8 = smov %s1436_s15 }
  0xd5   : > { %s1847_s9 = smov %s1424_s12  ;;  %16 = sbr.rel (!%p14_p7) target bundleno = 5 (0x5), region = 77 }
  0xdc   :  { %1097 = vsyncpa [#allocation3], 1 }
  0xdd   :  { %1099 = vsyncpa [#allocation3 + $0x1], 1 }
  0xde   :  { %1100 = vsyncpa [#allocation4], 1 }
  0xdf   :  { %1102 = vsyncpa [#allocation4 + $0x1], 1 }

</bundles_post_ra>
